<compile_context>
chip_gen: v6e
topology: v6e:2x2x1
jax: 0.10.0
libtpu: 0.0.40
codegen_flags: <defaults>
</compile_context>

<pallas_src>
import jax
import jax.numpy as jnp
from jax.experimental import pallas as pl
from jax.experimental.pallas import tpu as pltpu


def _round_up(x: int, m: int) -> int:
    return ((x + m - 1) // m) * m


def _residual_linear_kernel(x_ref, w_ref, b_ref, o_ref):
    # o = fn(x) + x, with fn(x) = x @ W + b
    x = x_ref[...]                                    # (TM, Dp) f32 tile
    # bf16 MXU operands, f32 accumulation.
    y = jnp.dot(x.astype(jnp.bfloat16), w_ref[...],
                preferred_element_type=jnp.float32)   # (TM, Dp) f32
    y = y + b_ref[...]                                # (1, Dp) f32 broadcast
    # Residual add with the ORIGINAL f32 x, cast once for the store.
    o_ref[...] = (y + x).astype(o_ref.dtype)


def residual_linear(x, w, b, *, tm: int = 256):
    """out = (x @ w + b) + x, fused in one Pallas kernel.

    x: (B, N, D) float32
    w: (D, D)    float32   (PyTorch Linear weight transposed: (in, out))
    b: (D,)      float32
    """
    B, N, D = x.shape
    M = B * N
    x2 = x.reshape(M, D)

    # Lane-dense last dim (multiple of 128) and tile-aligned M.
    Dp = max(_round_up(D, 128), 128)
    Mp = _round_up(M, 8)
    TM = min(tm, Mp)            # TM stays a multiple of 8
    Mp = _round_up(Mp, TM)      # ragged M handled by zero-padding, sliced below

    if (Mp, Dp) != (M, D):
        x2 = jnp.pad(x2, ((0, Mp - M), (0, Dp - D)))
    if Dp != D:
        w = jnp.pad(w, ((0, Dp - D), (0, Dp - D)))
        b = jnp.pad(b, ((0, Dp - D),))
    w_bf16 = w.astype(jnp.bfloat16)            # halves weight HBM/VMEM traffic
    b2 = b.reshape(1, Dp).astype(jnp.float32)

    grid = (Mp // TM,)

    # VMEM budget: double-buffered x tile + out tile, resident weight + bias.
    x_tile_bytes = TM * Dp * 4
    o_tile_bytes = TM * Dp * x.dtype.itemsize
    w_bytes = Dp * Dp * 2
    b_bytes = Dp * 4
    vmem_bytes = 2 * (x_tile_bytes + o_tile_bytes + w_bytes + b_bytes) + (1 << 20)
    vmem_bytes = min(max(vmem_bytes, 4 << 20), 60 << 20)   # under v7x 64 MiB/TC

    out2 = pl.pallas_call(
        _residual_linear_kernel,
        out_shape=jax.ShapeDtypeStruct((Mp, Dp), x.dtype),
        grid=grid,
        in_specs=[
            pl.BlockSpec((TM, Dp), lambda i: (i, 0)),   # x tile walks over M
            pl.BlockSpec((Dp, Dp), lambda i: (0, 0)),   # weight stays resident
            pl.BlockSpec((1, Dp), lambda i: (0, 0)),    # bias stays resident
        ],
        out_specs=pl.BlockSpec((TM, Dp), lambda i: (i, 0)),
        compiler_params=pltpu.CompilerParams(
            dimension_semantics=("parallel",),          # 2x on v7x megacore
            vmem_limit_bytes=vmem_bytes,
        ),
        cost_estimate=pl.CostEstimate(
            flops=2 * Mp * Dp * Dp,
            transcendentals=0,
            bytes_accessed=Mp * Dp * (4 + x.dtype.itemsize) + w_bytes + b_bytes,
        ),
    )(x2, w_bf16, b2)

    return out2[:M, :D].reshape(B, N, D)


def make_residual(fn_params):
    """Mirror of Residual(fn): returns a callable computing fn(x) + x."""
    w, b = fn_params

    def forward(x):
        return residual_linear(x, w, b)

    return forward


if __name__ == "__main__":
    key = jax.random.PRNGKey(0)
    k_x, k_w, k_b = jax.random.split(key, 3)

    B, N, D = 2, 8, 32  # batch, tokens, hidden (demo shape; padded to 128 lanes)
    x = jax.random.normal(k_x, (B, N, D), dtype=jnp.float32)

    # Deterministic Linear(D, D) parameters (PyTorch Linear: y = x @ W^T + b).
    w_torch = jax.random.normal(k_w, (D, D), dtype=jnp.float32) * 0.02  # (out, in)
    b_torch = jax.random.normal(k_b, (D,), dtype=jnp.float32) * 0.02
    w = w_torch.T  # (in, out) so kernel does x @ w

    residual_block = make_residual((w, b_torch))
    out = residual_block(x)
    out = jax.block_until_ready(out)

    # Reference check (plain JAX, f32): fn(x) + x.
    # bf16 MXU operands => relaxed tolerance, typical for ViT blocks.
    ref = (x @ w + b_torch) + x
    assert out.shape == (B, N, D)
    assert jnp.allclose(out, ref, atol=1e-2, rtol=1e-2), (
        float(jnp.max(jnp.abs(out - ref)))
    )

    print("KERNEL_OK")
</pallas_src>

<mosaic_0001>
module attributes {stable_mosaic.version = 11 : i64} {
  func.func @_residual_linear_kernel(%arg0: i32, %arg1: memref<16x128xf32, #tpu.memory_space<vmem>>, %arg2: memref<128x128xbf16, #tpu.memory_space<vmem>>, %arg3: memref<1x128xf32, #tpu.memory_space<vmem>>, %arg4: memref<16x128xf32, #tpu.memory_space<vmem>>) attributes {dimension_semantics = [#tpu.dimension_semantics<parallel>], iteration_bounds = array<i64: 1>, scalar_prefetch = 0 : i64, scratch_operands = 0 : i64, tpu.core_type = #tpu.core_type<tc>, window_params = [{transform_indices = @transform_0, window_bounds = array<i64: 16, 128>}, {pipeline_mode = #tpu.pipeline_mode<synchronous>, transform_indices = @transform_1, window_bounds = array<i64: 128, 128>}, {pipeline_mode = #tpu.pipeline_mode<synchronous>, transform_indices = @transform_2, window_bounds = array<i64: 1, 128>}, {transform_indices = @transform_3, window_bounds = array<i64: 16, 128>}]} {
    %c0 = arith.constant 0 : index
    %c0_0 = arith.constant 0 : index
    %0 = vector.load %arg1[%c0, %c0_0] : memref<16x128xf32, #tpu.memory_space<vmem>>, vector<16x128xf32>
    %1 = arith.truncf %0 : vector<16x128xf32> to vector<16x128xbf16>
    %c0_1 = arith.constant 0 : index
    %c0_2 = arith.constant 0 : index
    %2 = vector.load %arg2[%c0_1, %c0_2] : memref<128x128xbf16, #tpu.memory_space<vmem>>, vector<128x128xbf16>
    %cst = arith.constant dense<0.000000e+00> : vector<16x128xf32>
    %3 = tpu.matmul %1, %2, %cst {dimension_numbers = #tpu.dot_dimension_numbers<[1], [0], [0], [1], [0, 0, 1, 1], [], []>} : vector<16x128xbf16>, vector<128x128xbf16>, vector<16x128xf32> -> vector<16x128xf32>
    %c0_3 = arith.constant 0 : index
    %c0_4 = arith.constant 0 : index
    %4 = vector.load %arg3[%c0_3, %c0_4] : memref<1x128xf32, #tpu.memory_space<vmem>>, vector<1x128xf32>
    %5 = vector.broadcast %4 : vector<1x128xf32> to vector<16x128xf32>
    %6 = arith.addf %3, %5 : vector<16x128xf32>
    %7 = arith.addf %6, %0 : vector<16x128xf32>
    %c0_5 = arith.constant 0 : index
    %c0_6 = arith.constant 0 : index
    %8 = vector.load %arg4[%c0_5, %c0_6] : memref<16x128xf32, #tpu.memory_space<vmem>>, vector<16x128xf32>
    tpu.vector_store %arg4[%c0_5, %c0_6], %7 {strides = array<i32>} : memref<16x128xf32, #tpu.memory_space<vmem>>, vector<16x128xf32>,
    return
  }
  func.func @transform_0(%arg0: i32) -> (i32, i32) {
    %c0_i32 = arith.constant 0 : i32
    %c0_i32_0 = arith.constant 0 : i32
    return %arg0, %c0_i32 : i32, i32
  }
  func.func @transform_1(%arg0: i32) -> (i32, i32) {
    %c0_i32 = arith.constant 0 : i32
    %c0_i32_0 = arith.constant 0 : i32
    %c0_i32_1 = arith.constant 0 : i32
    return %c0_i32, %c0_i32_0 : i32, i32
  }
  func.func @transform_2(%arg0: i32) -> (i32, i32) {
    %c0_i32 = arith.constant 0 : i32
    %c0_i32_0 = arith.constant 0 : i32
    %c0_i32_1 = arith.constant 0 : i32
    return %c0_i32, %c0_i32_0 : i32, i32
  }
  func.func @transform_3(%arg0: i32) -> (i32, i32) {
    %c0_i32 = arith.constant 0 : i32
    %c0_i32_0 = arith.constant 0 : i32
    return %arg0, %c0_i32 : i32, i32
  }
}

</mosaic_0001>

<bundles_post_ra>
// kernel: tpu_custom_call.1
= control target key start
LH: loop header
LB: loop body
LE: loop exit
PB: predicated region body
PF: predicated region fallthrough
CT: control target
= control target key end

     0   :  { %8 = vsyncpa [#allocation3], 0  ;;  %s349_s0 = inlined_call_operand.hbm [shape: f32[16,128], index: 0, kind: input, shape index: {}]   ;;  %s350_s1 = inlined_call_operand.hbm [shape: bf16[128,128], index: 1, kind: input, shape index: {}]   ;;  %s351_s2 = inlined_call_operand.vmem [shape: f32[1,128], index: 2, kind: input, shape index: {}]   ;;  %s352_s3 = inlined_call_operand.hbm [shape: f32[16,128], index: 3, kind: output, shape index: {}]  }
   0x1   :  { %9 = vsyncpa [#allocation6], 0 }
   0x2   :  { %10 = vsyncpa [#allocation4], 0  ;;  %s302_s12 = smov [#allocation2]  }
   0x3   :  { %s16_s13 = sshll.u32 %s302_s12, 4  ;;  %s17_s13 = int_to_ptr.vmem [resolvable:$true] %s16_s13 }
   0x4   :  { %s244_s14 = scalar_lea.vmem %s17_s13, 256  ;;  %p249_p1 = scmp.lt.s32.totalorder %s17_s13, %s17_s13 }
   0x5   :  { %p245_p0 = scmp.ne.s32.totalorder %s17_s13, %s244_s14  ;;  %p250_p2 = scmp.lt.s32.totalorder %s244_s14, %s244_s14 }
   0x7   :  { %p251_p3 = por %p250_p2, %p249_p1 }
   0x9   :  { %p252_p4 = pnand %p251_p3, %p245_p0 }
   0xb   :  { %255 = shalt.err (!%p252_p4)
}
   0xc   :  { %s303_s15 = smov 128   ;;  %s304_s16 = smov 8  }
   0xd   :  { %22 = dma.hbm_to_vmem [thread:$0]  %s349_s0, 256, %s17_s13, [#allocation3], %s303_s15, %s303_s15, %s304_s16  }
   0xe   :  { %s305_s19 = smov [#allocation5]  }
   0xf   :  { %s28_s20 = sshll.u32 %s305_s19, 4  ;;  %s29_s20 = int_to_ptr.vmem [resolvable:$true] %s28_s20 }
  0x10   :  { %s264_s21 = scalar_lea.vmem %s29_s20, 1024  ;;  %p269_p6 = scmp.lt.s32.totalorder %s29_s20, %s29_s20 }
  0x11   :  { %p265_p5 = scmp.ne.s32.totalorder %s29_s20, %s264_s21  ;;  %p270_p7 = scmp.lt.s32.totalorder %s264_s21, %s264_s21 }
  0x13   :  { %p271_p8 = por %p270_p7, %p269_p6 }
  0x15   :  { %p272_p9 = pnand %p271_p8, %p265_p5 }
  0x17   :  { %275 = shalt.err (!%p272_p9)
}
  0x18   :  { %s306_s22 = smov 64   ;;  %s307_s23 = smov 4  }
  0x19   :  { %34 = dma.hbm_to_vmem [thread:$0]  %s350_s1, 1024, %s29_s20, [#allocation6], %s306_s22, %s306_s22, %s307_s23  }
  0x1a   :  { %296 = dma.done.wait [#allocation3], 256  }
  0x1b   :  { %297 = vsyncadd [#allocation3], 4294967040 }
  0x1c   :  { %298 = dma.done.wait [#allocation6], 1024  }
  0x1d   :  { %299 = vsyncadd [#allocation6], 4294966272  ;;  %v308_v0 = vmov 0.0   ;;  %vm309_vm0 = vmmov 0   ;;  %v228_v1 = vld [vmem:[#allocation5 + $0x38] sm:$0xff]   ;;  %v229_v2 = vld [vmem:[#allocation5 + $0x30] sm:$0xff]  }
  0x1e   :  { %199 = vmatprep.subr.bf16.mxu0 %v308_v0  ;;  %215 = vmatprep.mubr.msk.bf16.mxu0 %vm309_vm0, %v308_v0  ;;  %v230_v3 = vld [vmem:[#allocation5 + $0x28] sm:$0xff]   ;;  %v231_v4 = vld [vmem:[#allocation5 + $0x20] sm:$0xff]   ;;  %v232_v5 = vld [vmem:[#allocation5 + $0x18] sm:$0xff]   ;;  %s310_s26 = smov [#allocation7]  }
  0x1f   :  { %200 = vmatpush3.bf16.msra.mxu0 %v228_v1  ;;  %v233_v6 = vld [vmem:[#allocation5 + $0x10] sm:$0xff]   ;;  %v234_v7 = vld [vmem:[#allocation5 + $0x8] sm:$0xff]   ;;  %v235_v8 = vld [vmem:[#allocation5] sm:$0xff]   ;;  %s168_s27 = sshll.u32 %s310_s26, 4  ;;  %s169_s27 = int_to_ptr.vmem [resolvable:$true] %s168_s27 }
  0x20   :  { %201 = vmatprep.subr.bf16.mxu0 %v308_v0  ;;  %v44_v9 = vld [vmem:[#allocation2] sm:$0xff]  ;;  %v45_v10 = vld [vmem:[#allocation2 + $0x8] sm:$0xff]  ;;  %s276_s28 = scalar_lea.vmem %s169_s27, 256  ;;  %p281_p11 = scmp.lt.s32.totalorder %s169_s27, %s169_s27 }
  0x21   :  { %v46_v11 = vpack.c.bf16 %v45_v10, %v44_v9  ;;  %v181_v12 = vld [vmem:[%s351_s2] ss:$0 sm:$0xff]  ;;  %p277_p10 = scmp.ne.s32.totalorder %s169_s27, %s276_s28  ;;  %p282_p12 = scmp.lt.s32.totalorder %s276_s28, %s276_s28 }
  0x23   :  { %202 = vmatpush3.bf16.msra.mxu0 %v229_v2  ;;  %p283_p13 = por %p282_p12, %p281_p11 }
  0x24   :  { %203 = vmatprep.subr.bf16.mxu0 %v308_v0 }
  0x25   :  { %p284_p0 = pnand %p283_p13, %p277_p10 }
  0x27   :  { %204 = vmatpush3.bf16.msra.mxu0 %v230_v3 }
  0x28   :  { %205 = vmatprep.subr.bf16.mxu0 %v308_v0 }
  0x2b   :  { %206 = vmatpush3.bf16.msra.mxu0 %v231_v4 }
  0x2c   :  { %207 = vmatprep.subr.bf16.mxu0 %v308_v0 }
  0x2f   :  { %208 = vmatpush3.bf16.msra.mxu0 %v232_v5 }
  0x30   :  { %209 = vmatprep.subr.bf16.mxu0 %v308_v0 }
  0x33   :  { %210 = vmatpush3.bf16.msra.mxu0 %v233_v6 }
  0x34   :  { %211 = vmatprep.subr.bf16.mxu0 %v308_v0 }
  0x37   :  { %212 = vmatpush3.bf16.msra.mxu0 %v234_v7 }
  0x38   :  { %213 = vmatprep.subr.bf16.mxu0 %v308_v0 }
  0x3b   :  { %214 = vmatpush3.bf16.msra.mxu0 %v235_v8 }
  0x3e   :  { %216 = vmatmul.mubr.bf16.vlgmr.msra.gmra.mxu0 %v46_v11 }
  0xfe   :  { %v152_v13 = vpop.f32.mrf.mxu0 }
  0xff   :  { %v153_v14 = vadd.f32 %v181_v12, %v152_v13 }
 0x100   :  { %v217_v15 = vpop.f32.mrf.mxu0 }
 0x101   :  { %v159_v16 = vadd.f32 %v153_v14, %v44_v9 }
 0x102   :  { %v155_v17 = vpop.f32.mrf.mxu0 }
 0x103   :  { %161 = vst [vmem:[#allocation7] sm:$0xff] %v159_v16  ;;  %v156_v18 = vadd.f32 %v181_v12, %v155_v17 }
 0x104   :  { %v218_v19 = vpop.f32.mrf.mxu0 }
 0x105   :  { %v160_v20 = vadd.f32 %v156_v18, %v45_v10 }
 0x107   :  { %162 = vst [vmem:[#allocation7 + $0x8] sm:$0xff] %v160_v20 }
 0x108   :  { %287 = shalt.err (!%p284_p0)
}
 0x109   :  { %174 = dma.vmem_to_hbm [thread:$0]  %s169_s27, 256, %s352_s3, [#allocation4], %s303_s15, %s303_s15, %s304_s16  }
 0x10a   :  { %300 = dma.done.wait [#allocation4], 256  }
 0x10b   :  { %301 = vsyncadd [#allocation4], 4294967040 }
 0x10c   :  { %178 = vsyncpa [#allocation3], 1 }
 0x10d   :  { %179 = vsyncpa [#allocation6], 1 }
 0x10e   :  { %180 = vsyncpa [#allocation4], 1 }

</bundles_post_ra>
